<compile_context>
chip_gen: v6e
topology: v6e:2x2x1
jax: 0.10.0
libtpu: 0.0.40
codegen_flags: <defaults>
</compile_context>

<pallas_src>
import functools

import numpy as np
import jax
import jax.numpy as jnp
from jax.experimental import pallas as pl
from jax.experimental.pallas import tpu as pltpu

_LANES = 128


def _criterion_kernel(rem_pos_ref, rem_neg_ref, d_ref, cls_ref, u_ref, lt_ref,
                      out_ref):
    """Processes one (TM, 128) lane-packed tile and emits partial sums.

    rem_pos_ref: SMEM (nt,) i32  remaining positive keep budget for this tile
                                 (clamped to [0, TM*128] -> exact in f32)
    rem_neg_ref: SMEM (nt,) i32  remaining negative keep budget for this tile
    d_ref:       VMEM (TM, 128)  f32   logit difference l1 - l0
    cls_ref:     VMEM (TM, 128)  int8  0 = unselected/pad, 1 = sel neg, 2 = sel pos
    u_ref:       VMEM (128,128)  bf16  strict upper triangle (resident constant)
    lt_ref:      VMEM (TM, TM)   bf16  strict lower triangle (resident constant)
    out_ref:     SMEM (1, 3)     f32   [sum keep*ce, sum keep*correct, sum keep]
    """
    step = pl.program_id(0)

    d = d_ref[...]                                   # (TM, 128) f32
    cls = cls_ref[...].astype(jnp.int32)             # int8 -> int32 unpack
    pos_b = cls == 2
    neg_b = cls == 1

    pos16 = pos_b.astype(jnp.bfloat16)
    neg16 = neg_b.astype(jnp.bfloat16)
    u = u_ref[...]                                   # strict upper tri
    lt = lt_ref[...]                                 # strict lower tri

    # ---- exclusive prefix counts in global flatten order (all on the MXU) --
    # Lane direction: x @ U_strict gives the per-row *exclusive* cumsum.
    cpos = jnp.dot(pos16, u, preferred_element_type=jnp.float32)   # (TM,128)
    cneg = jnp.dot(neg16, u, preferred_element_type=jnp.float32)

    # Sublane direction: exclusive prefix of per-row totals via a tiny matvec.
    last = _LANES - 1
    row_pos = (cpos[:, last:] + pos16[:, last:]).astype(jnp.bfloat16)  # (TM,1) <=128
    row_neg = (cneg[:, last:] + neg16[:, last:]).astype(jnp.bfloat16)
    rp_pos = jnp.dot(lt, row_pos, preferred_element_type=jnp.float32)  # (TM,1)
    rp_neg = jnp.dot(lt, row_neg, preferred_element_type=jnp.float32)

    prefix_pos = rp_pos + cpos      # in-tile exclusive pos count, <= TM*128 (exact)
    prefix_neg = rp_neg + cneg

    rem_pos = rem_pos_ref[step].astype(jnp.float32)
    rem_neg = rem_neg_ref[step].astype(jnp.float32)
    keep_b = (pos_b & (prefix_pos < rem_pos)) | (neg_b & (prefix_neg < rem_neg))

    # ---- per-element loss / correctness on the logit difference ------------
    # 2-class CE: logsumexp([l0,l1]) - l_label = softplus(-d) if pos else softplus(d)
    z = jnp.where(pos_b, -d, d)
    ce = jnp.maximum(z, 0.0) + jnp.log(1.0 + jnp.exp(-jnp.abs(z)))
    # argmax over (l0,l1); ties -> class 0 (matches torch.topk).  correct iff
    # predicted class == label, i.e. (d <= 0) XOR is_positive.
    correct_b = jnp.logical_xor(d <= 0.0, pos_b)

    out_ref[0, 0] = jnp.sum(jnp.where(keep_b, ce, 0.0))
    out_ref[0, 1] = jnp.sum((keep_b & correct_b).astype(jnp.float32))
    out_ref[0, 2] = jnp.sum(keep_b.astype(jnp.float32))


@functools.partial(jax.jit, static_argnames=("tile_rows",))
def pos_neg_balance_list_criterion(match_matrix, targets, impossible_mask,
                                   tile_rows=512):
    """JAX/Pallas equivalent of PosNegBalanceListCriterion.forward.

    match_matrix:    (B, D, T, 2) float  [batch, detections, tracks, 2 logits]
    targets:         (B, D) int32        matched track index, -1 for no match
    impossible_mask: (B, D, T) bool      True = sample is selected
    Returns ({'loss_ce': scalar}, {'precision': scalar}).
    """
    B, D, T, C = match_matrix.shape
    assert C == 2, "binary match/no-match logits expected"
    f32 = jnp.float32

    mm = match_matrix.astype(f32)
    d = mm[..., 1] - mm[..., 0]                                       # (B, D, T)
    sel = impossible_mask.astype(jnp.bool_)
    label = targets[..., None] == jnp.arange(T, dtype=targets.dtype)  # -1 never matches
    pos = jnp.logical_and(sel, label)
    cls = sel.astype(jnp.int8) + pos.astype(jnp.int8)                 # {0,1,2} int8

    # Lane-dense packing: flatten in (b, det, track) order, pad with class 0,
    # reshape to rows of 128 lanes.  Flatten order (hence all prefix counts /
    # truncation semantics) is preserved.
    n = B * D * T
    rows = -(-n // _LANES)
    tm = min(int(tile_rows), rows)
    if rows > 32:
        tm = min(tm, -(-rows // 2))        # >= 2 tiles when possible (v7x megacore)
    tm = max(32, -(-tm // 32) * 32)        # int8 (32,128) sublane tiling
    num_tiles = -(-rows // tm)
    rows_pad = num_tiles * tm
    pad = rows_pad * _LANES - n

    d_packed = jnp.pad(d.reshape(-1), (0, pad)).reshape(rows_pad, _LANES)
    cls_flat = jnp.pad(cls.reshape(-1), (0, pad))
    cls_packed = cls_flat.reshape(rows_pad, _LANES)

    # Per-tile remaining keep budgets (int32 exact end-to-end, then clamped to
    # <= tm*128 so the in-kernel f32 comparison is exact for any input size).
    cls_tiles = cls_flat.reshape(num_tiles, tm * _LANES)
    pos_per_tile = jnp.sum(cls_tiles == 2, axis=1, dtype=jnp.int32)   # (nt,)
    neg_per_tile = jnp.sum(cls_tiles == 1, axis=1, dtype=jnp.int32)
    n_pos = jnp.sum(pos_per_tile)
    n_neg = jnp.sum(neg_per_tile)
    pos_base = jnp.cumsum(pos_per_tile) - pos_per_tile                # exclusive
    neg_base = jnp.cumsum(neg_per_tile) - neg_per_tile
    cond = n_pos > n_neg
    # if n_pos > n_neg: keep all neg + first max(n_neg, 1) pos
    # else:             keep all pos + first max(n_pos, 1) neg
    cap_pos = jnp.where(cond, jnp.maximum(n_neg, 1), n_pos)
    cap_neg = jnp.where(cond, n_neg, jnp.maximum(n_pos, 1))
    tile_elems = tm * _LANES
    rem_pos = jnp.clip(cap_pos - pos_base, 0, tile_elems).astype(jnp.int32)
    rem_neg = jnp.clip(cap_neg - neg_base, 0, tile_elems).astype(jnp.int32)

    # Resident triangular constants (bf16, exact for 0/1 values).
    lane = np.arange(_LANES)
    u_strict = jnp.asarray((lane[:, None] < lane[None, :]).astype(np.float32),
                           dtype=jnp.bfloat16)                        # (128,128)
    ridx = np.arange(tm)
    lower_tri = jnp.asarray((ridx[None, :] < ridx[:, None]).astype(np.float32),
                            dtype=jnp.bfloat16)                       # (tm,tm)

    grid_spec = pltpu.PrefetchScalarGridSpec(
        num_scalar_prefetch=2,
        grid=(num_tiles,),
        in_specs=[
            pl.BlockSpec((tm, _LANES), lambda i, *_: (i, 0)),       # d
            pl.BlockSpec((tm, _LANES), lambda i, *_: (i, 0)),       # cls (int8)
            pl.BlockSpec((_LANES, _LANES), lambda i, *_: (0, 0)),   # upper tri (resident)
            pl.BlockSpec((tm, tm), lambda i, *_: (0, 0)),           # lower tri (resident)
        ],
        out_specs=pl.BlockSpec((1, 3), lambda i, *_: (i, 0),
                               memory_space=pltpu.MemorySpace.SMEM),
    )
    partials = pl.pallas_call(
        _criterion_kernel,
        grid_spec=grid_spec,
        out_shape=jax.ShapeDtypeStruct((num_tiles, 3), f32),
        compiler_params=pltpu.CompilerParams(
            dimension_semantics=("parallel",)),
    )(rem_pos, rem_neg, d_packed, cls_packed, u_strict, lower_tri)

    sums = jnp.sum(partials, axis=0)
    n_keep = sums[2]
    # Torch parity: loss divides by bare n_keep (degenerates like
    # F.cross_entropy on an empty batch if nothing is selected); precision
    # keeps the +1e-5 guard.
    losses = {'loss_ce': (sums[0] / n_keep) / B}
    accuracy = {'precision': sums[1] / (n_keep + 1e-5)}
    # TODO(synk): `batch_diff_threshold` in the torch module is a defaultdict
    # that is never populated, so no extra accuracy keys are produced here.
    return losses, accuracy


def _reference_numpy(match, targets, mask, B):
    """Direct numpy port of the PyTorch forward for verification."""
    preds, labels = [], []
    for b in range(B):
        Dn, Tn = match[b].shape[:2]
        heat = np.zeros((Dn, Tn), dtype=np.int64)
        for i, lab in enumerate(targets[b]):
            if lab != -1:
                heat[i, lab] = 1
        sel = np.where(mask[b].reshape(-1))[0]
        preds.append(match[b].reshape(-1, match[b].shape[-1])[sel])
        labels.append(heat.reshape(-1)[sel])
    preds = np.concatenate(preds, 0)
    labels = np.concatenate(labels, 0)
    pos_idx = np.where(labels == 1)[0]
    neg_idx = np.where(labels == 0)[0]
    if len(pos_idx) > len(neg_idx):
        neg_p, neg_l = preds[neg_idx], labels[neg_idx]
        pos_p = preds[pos_idx[:max(len(neg_idx), 1)]]
        pos_l = labels[pos_idx[:max(len(neg_idx), 1)]]
    else:
        pos_p, pos_l = preds[pos_idx], labels[pos_idx]
        neg_p = preds[neg_idx[:max(len(pos_idx), 1)]]
        neg_l = labels[neg_idx[:max(len(pos_idx), 1)]]
    P = np.concatenate([pos_p, neg_p], 0)
    L = np.concatenate([pos_l, neg_l], 0)
    mx = P.max(axis=1, keepdims=True)
    lse = mx[:, 0] + np.log(np.exp(P - mx).sum(1))
    ce = lse - P[np.arange(len(L)), L]
    loss = ce.mean() / B
    correct = float((P.argmax(1) == L).sum())
    prec = correct / (len(L) + 1e-5)
    return float(loss), float(prec)


if __name__ == "__main__":
    key = jax.random.PRNGKey(0)
    # (B, D, T): small single-tile case + a multi-tile case exercising the
    # cross-tile prefix bases.
    for (B, D, T) in [(2, 8, 16), (2, 64, 80)]:
        key, k1, k2, k3 = jax.random.split(key, 4)
        match = jax.random.normal(k1, (B, D, T, 2), dtype=jnp.float32)
        targets = jax.random.randint(k2, (B, D), -1, T, dtype=jnp.int32)
        impossible_mask = jax.random.uniform(k3, (B, D, T)) < 0.8

        losses, acc = pos_neg_balance_list_criterion(match, targets,
                                                     impossible_mask)
        loss_ce = float(jax.block_until_ready(losses['loss_ce']))
        precision = float(jax.block_until_ready(acc['precision']))

        ref_loss, ref_prec = _reference_numpy(
            np.asarray(match), np.asarray(targets),
            np.asarray(impossible_mask), B)
        assert np.allclose(loss_ce, ref_loss, rtol=1e-4, atol=1e-5), \
            (B, D, T, loss_ce, ref_loss)
        assert np.allclose(precision, ref_prec, rtol=1e-4, atol=1e-5), \
            (B, D, T, precision, ref_prec)

    print("KERNEL_OK")
</pallas_src>

<mosaic_0001>
module attributes {stable_mosaic.version = 11 : i64} {
  func.func @_criterion_kernel(%arg0: i32, %arg1: memref<1xi32, #tpu.memory_space<smem>>, %arg2: memref<1xi32, #tpu.memory_space<smem>>, %arg3: memref<32x128xf32, #tpu.memory_space<vmem>>, %arg4: memref<32x128xi8, #tpu.memory_space<vmem>>, %arg5: memref<128x128xbf16, #tpu.memory_space<vmem>>, %arg6: memref<32x32xbf16, #tpu.memory_space<vmem>>, %arg7: memref<1x3xf32, #tpu.memory_space<smem>>) attributes {dimension_semantics = [#tpu.dimension_semantics<parallel>], iteration_bounds = array<i64: 1>, scalar_prefetch = 2 : i64, scratch_operands = 0 : i64, tpu.core_type = #tpu.core_type<tc>, window_params = [{transform_indices = @transform_0, window_bounds = array<i64: 32, 128>}, {transform_indices = @transform_1, window_bounds = array<i64: 32, 128>}, {pipeline_mode = #tpu.pipeline_mode<synchronous>, transform_indices = @transform_2, window_bounds = array<i64: 128, 128>}, {pipeline_mode = #tpu.pipeline_mode<synchronous>, transform_indices = @transform_3, window_bounds = array<i64: 32, 32>}, {transform_indices = @transform_4, window_bounds = array<i64: 1, 3>}]} {
    %c0 = arith.constant 0 : index
    %c0_0 = arith.constant 0 : index
    %0 = vector.load %arg3[%c0, %c0_0] : memref<32x128xf32, #tpu.memory_space<vmem>>, vector<32x128xf32>
    %c0_1 = arith.constant 0 : index
    %c0_2 = arith.constant 0 : index
    %1 = vector.load %arg4[%c0_1, %c0_2] : memref<32x128xi8, #tpu.memory_space<vmem>>, vector<32x128xi8>
    %2 = arith.extsi %1 : vector<32x128xi8> to vector<32x128xi32>
    %c2_i32 = arith.constant 2 : i32
    %3 = vector.broadcast %c2_i32 : i32 to vector<32x128xi32>
    %4 = arith.cmpi eq, %2, %3 : vector<32x128xi32>
    %c1_i32 = arith.constant 1 : i32
    %5 = vector.broadcast %c1_i32 : i32 to vector<32x128xi32>
    %6 = arith.cmpi eq, %2, %5 : vector<32x128xi32>
    %7 = arith.extui %4 : vector<32x128xi1> to vector<32x128xi32>
    %8 = arith.sitofp %7 : vector<32x128xi32> to vector<32x128xf32>
    %9 = arith.truncf %8 : vector<32x128xf32> to vector<32x128xbf16>
    %10 = arith.extui %6 : vector<32x128xi1> to vector<32x128xi32>
    %11 = arith.sitofp %10 : vector<32x128xi32> to vector<32x128xf32>
    %12 = arith.truncf %11 : vector<32x128xf32> to vector<32x128xbf16>
    %c0_3 = arith.constant 0 : index
    %c0_4 = arith.constant 0 : index
    %13 = vector.load %arg5[%c0_3, %c0_4] : memref<128x128xbf16, #tpu.memory_space<vmem>>, vector<128x128xbf16>
    %c0_5 = arith.constant 0 : index
    %c0_6 = arith.constant 0 : index
    %14 = vector.load %arg6[%c0_5, %c0_6] : memref<32x32xbf16, #tpu.memory_space<vmem>>, vector<32x32xbf16>
    %cst = arith.constant dense<0.000000e+00> : vector<32x128xf32>
    %15 = tpu.matmul %9, %13, %cst {dimension_numbers = #tpu.dot_dimension_numbers<[1], [0], [0], [1], [0, 0, 1, 1], [], []>} : vector<32x128xbf16>, vector<128x128xbf16>, vector<32x128xf32> -> vector<32x128xf32>
    %cst_7 = arith.constant dense<0.000000e+00> : vector<32x128xf32>
    %16 = tpu.matmul %12, %13, %cst_7 {dimension_numbers = #tpu.dot_dimension_numbers<[1], [0], [0], [1], [0, 0, 1, 1], [], []>} : vector<32x128xbf16>, vector<128x128xbf16>, vector<32x128xf32> -> vector<32x128xf32>
    %17 = vector.extract_strided_slice %15 {offsets = [0, 127], sizes = [32, 1], strides = [1, 1]} : vector<32x128xf32> to vector<32x1xf32>
    %18 = vector.extract_strided_slice %9 {offsets = [0, 127], sizes = [32, 1], strides = [1, 1]} : vector<32x128xbf16> to vector<32x1xbf16>
    %19 = arith.extf %18 : vector<32x1xbf16> to vector<32x1xf32>
    %20 = arith.addf %17, %19 : vector<32x1xf32>
    %21 = arith.truncf %20 : vector<32x1xf32> to vector<32x1xbf16>
    %22 = vector.extract_strided_slice %16 {offsets = [0, 127], sizes = [32, 1], strides = [1, 1]} : vector<32x128xf32> to vector<32x1xf32>
    %23 = vector.extract_strided_slice %12 {offsets = [0, 127], sizes = [32, 1], strides = [1, 1]} : vector<32x128xbf16> to vector<32x1xbf16>
    %24 = arith.extf %23 : vector<32x1xbf16> to vector<32x1xf32>
    %25 = arith.addf %22, %24 : vector<32x1xf32>
    %26 = arith.truncf %25 : vector<32x1xf32> to vector<32x1xbf16>
    %cst_8 = arith.constant dense<0.000000e+00> : vector<32x1xf32>
    %27 = tpu.matmul %14, %21, %cst_8 {dimension_numbers = #tpu.dot_dimension_numbers<[1], [0], [0], [1], [0, 0, 1, 1], [], []>} : vector<32x32xbf16>, vector<32x1xbf16>, vector<32x1xf32> -> vector<32x1xf32>
    %cst_9 = arith.constant dense<0.000000e+00> : vector<32x1xf32>
    %28 = tpu.matmul %14, %26, %cst_9 {dimension_numbers = #tpu.dot_dimension_numbers<[1], [0], [0], [1], [0, 0, 1, 1], [], []>} : vector<32x32xbf16>, vector<32x1xbf16>, vector<32x1xf32> -> vector<32x1xf32>
    %29 = vector.broadcast %27 : vector<32x1xf32> to vector<32x128xf32>
    %30 = arith.addf %29, %15 : vector<32x128xf32>
    %31 = vector.broadcast %28 : vector<32x1xf32> to vector<32x128xf32>
    %32 = arith.addf %31, %16 : vector<32x128xf32>
    %33 = arith.index_cast %arg0 : i32 to index
    %34 = memref.load %arg1[%33] : memref<1xi32, #tpu.memory_space<smem>>
    %35 = arith.sitofp %34 : i32 to f32
    %36 = arith.index_cast %arg0 : i32 to index
    %37 = memref.load %arg2[%36] : memref<1xi32, #tpu.memory_space<smem>>
    %38 = arith.sitofp %37 : i32 to f32
    %39 = vector.broadcast %35 : f32 to vector<32x128xf32>
    %40 = arith.cmpf olt, %30, %39 : vector<32x128xf32>
    %41 = arith.andi %4, %40 : vector<32x128xi1>
    %42 = vector.broadcast %38 : f32 to vector<32x128xf32>
    %43 = arith.cmpf olt, %32, %42 : vector<32x128xf32>
    %44 = arith.andi %6, %43 : vector<32x128xi1>
    %45 = arith.ori %41, %44 : vector<32x128xi1>
    %cst_10 = arith.constant 0.000000e+00 : f32
    %46 = vector.broadcast %cst_10 : f32 to vector<32x128xf32>
    %47 = arith.subf %46, %0 : vector<32x128xf32>
    %48 = arith.select %4, %47, %0 : vector<32x128xi1>, vector<32x128xf32>
    %cst_11 = arith.constant 0.000000e+00 : f32
    %49 = vector.broadcast %cst_11 : f32 to vector<32x128xf32>
    %50 = arith.maximumf %48, %49 : vector<32x128xf32>
    %51 = math.absf %48 : vector<32x128xf32>
    %cst_12 = arith.constant 0.000000e+00 : f32
    %52 = vector.broadcast %cst_12 : f32 to vector<32x128xf32>
    %53 = arith.subf %52, %51 : vector<32x128xf32>
    %54 = math.exp %53 : vector<32x128xf32>
    %cst_13 = arith.constant 1.000000e+00 : f32
    %55 = vector.broadcast %cst_13 : f32 to vector<32x128xf32>
    %56 = arith.addf %55, %54 : vector<32x128xf32>
    %57 = math.log %56 : vector<32x128xf32>
    %58 = arith.addf %50, %57 : vector<32x128xf32>
    %cst_14 = arith.constant 0.000000e+00 : f32
    %59 = vector.broadcast %cst_14 : f32 to vector<32x128xf32>
    %60 = arith.cmpf ole, %0, %59 : vector<32x128xf32>
    %61 = arith.xori %60, %4 : vector<32x128xi1>
    %cst_15 = arith.constant 0.000000e+00 : f32
    %62 = vector.broadcast %cst_15 : f32 to vector<32x128xf32>
    %63 = arith.select %45, %58, %62 : vector<32x128xi1>, vector<32x128xf32>
    %64 = vector.shape_cast %63 : vector<32x128xf32> to vector<1x32x128xf32>
    %cst_16 = arith.constant dense<0.000000e+00> : vector<1xf32>
    %65 = vector.multi_reduction <add>, %64, %cst_16 [1, 2] : vector<1x32x128xf32> to vector<1xf32>
    %66 = vector.shape_cast %65 : vector<1xf32> to vector<1x1x1xf32>
    %67 = vector.extract %66[0, 0, 0] : f32 from vector<1x1x1xf32>
    %c0_17 = arith.constant 0 : index
    %c0_18 = arith.constant 0 : index
    %68 = memref.load %arg7[%c0_17, %c0_18] : memref<1x3xf32, #tpu.memory_space<smem>>
    memref.store %67, %arg7[%c0_17, %c0_18] : memref<1x3xf32, #tpu.memory_space<smem>>
    %69 = arith.andi %45, %61 : vector<32x128xi1>
    %70 = arith.extui %69 : vector<32x128xi1> to vector<32x128xi32>
    %71 = arith.sitofp %70 : vector<32x128xi32> to vector<32x128xf32>
    %72 = vector.shape_cast %71 : vector<32x128xf32> to vector<1x32x128xf32>
    %cst_19 = arith.constant dense<0.000000e+00> : vector<1xf32>
    %73 = vector.multi_reduction <add>, %72, %cst_19 [1, 2] : vector<1x32x128xf32> to vector<1xf32>
    %74 = vector.shape_cast %73 : vector<1xf32> to vector<1x1x1xf32>
    %75 = vector.extract %74[0, 0, 0] : f32 from vector<1x1x1xf32>
    %c0_20 = arith.constant 0 : index
    %c1 = arith.constant 1 : index
    %76 = memref.load %arg7[%c0_20, %c1] : memref<1x3xf32, #tpu.memory_space<smem>>
    memref.store %75, %arg7[%c0_20, %c1] : memref<1x3xf32, #tpu.memory_space<smem>>
    %77 = arith.extui %45 : vector<32x128xi1> to vector<32x128xi32>
    %78 = arith.sitofp %77 : vector<32x128xi32> to vector<32x128xf32>
    %79 = vector.shape_cast %78 : vector<32x128xf32> to vector<1x32x128xf32>
    %cst_21 = arith.constant dense<0.000000e+00> : vector<1xf32>
    %80 = vector.multi_reduction <add>, %79, %cst_21 [1, 2] : vector<1x32x128xf32> to vector<1xf32>
    %81 = vector.shape_cast %80 : vector<1xf32> to vector<1x1x1xf32>
    %82 = vector.extract %81[0, 0, 0] : f32 from vector<1x1x1xf32>
    %c0_22 = arith.constant 0 : index
    %c2 = arith.constant 2 : index
    %83 = memref.load %arg7[%c0_22, %c2] : memref<1x3xf32, #tpu.memory_space<smem>>
    memref.store %82, %arg7[%c0_22, %c2] : memref<1x3xf32, #tpu.memory_space<smem>>
    return
  }
  func.func @transform_0(%arg0: i32, %arg1: memref<1xi32, #tpu.memory_space<smem>>, %arg2: memref<1xi32, #tpu.memory_space<smem>>) -> (i32, i32) {
    %c0_i32 = arith.constant 0 : i32
    %c0_i32_0 = arith.constant 0 : i32
    return %arg0, %c0_i32 : i32, i32
  }
  func.func @transform_1(%arg0: i32, %arg1: memref<1xi32, #tpu.memory_space<smem>>, %arg2: memref<1xi32, #tpu.memory_space<smem>>) -> (i32, i32) {
    %c0_i32 = arith.constant 0 : i32
    %c0_i32_0 = arith.constant 0 : i32
    return %arg0, %c0_i32 : i32, i32
  }
  func.func @transform_2(%arg0: i32, %arg1: memref<1xi32, #tpu.memory_space<smem>>, %arg2: memref<1xi32, #tpu.memory_space<smem>>) -> (i32, i32) {
    %c0_i32 = arith.constant 0 : i32
    %c0_i32_0 = arith.constant 0 : i32
    %c0_i32_1 = arith.constant 0 : i32
    return %c0_i32, %c0_i32_0 : i32, i32
  }
  func.func @transform_3(%arg0: i32, %arg1: memref<1xi32, #tpu.memory_space<smem>>, %arg2: memref<1xi32, #tpu.memory_space<smem>>) -> (i32, i32) {
    %c0_i32 = arith.constant 0 : i32
    %c0_i32_0 = arith.constant 0 : i32
    %c0_i32_1 = arith.constant 0 : i32
    return %c0_i32, %c0_i32_0 : i32, i32
  }
  func.func @transform_4(%arg0: i32, %arg1: memref<1xi32, #tpu.memory_space<smem>>, %arg2: memref<1xi32, #tpu.memory_space<smem>>) -> (i32, i32) {
    %c0_i32 = arith.constant 0 : i32
    %c0_i32_0 = arith.constant 0 : i32
    return %arg0, %c0_i32 : i32, i32
  }
}

</mosaic_0001>

<bundles_post_ra>
// kernel: pos_neg_balance_list_criterion.1
= control target key start
LH: loop header
LB: loop body
LE: loop exit
PB: predicated region body
PF: predicated region fallthrough
CT: control target
= control target key end

     0   :  { %s1088_s0 = inlined_call_operand.<no memory space> [shape: s32[1], index: 0, kind: input, shape index: {}]   ;;  %s1089_s1 = inlined_call_operand.<no memory space> [shape: s32[1], index: 1, kind: input, shape index: {}]   ;;  %s1090_s2 = inlined_call_operand.vmem [shape: f32[32,128], index: 2, kind: input, shape index: {}]   ;;  %s1091_s3 = inlined_call_operand.vmem [shape: s8[32,128], index: 3, kind: input, shape index: {}]   ;;  %s1092_s4 = inlined_call_operand.vmem [shape: bf16[128,128], index: 4, kind: input, shape index: {}]   ;;  %s1093_s5 = inlined_call_operand.vmem [shape: bf16[32,32], index: 5, kind: input, shape index: {}]   ;;  %s1094_s6 = inlined_call_operand.vmem [shape: f32[1,3], index: 6, kind: output, shape index: {}]  }
   0x1   :  { %v719_v0 = vld [vmem:[%s1092_s4 + $0x38] sm:$0xff]   ;;  %v720_v1 = vld [vmem:[%s1092_s4 + $0x30] sm:$0xff]   ;;  %v721_v2 = vld [vmem:[%s1092_s4 + $0x28] sm:$0xff]  }
   0x2   :  { %650 = vmatprep.subr.bf16.mxu0 %v719_v0  ;;  %670 = vmatprep.subr.bf16.mxu1 %v719_v0  ;;  %v722_v3 = vld [vmem:[%s1092_s4 + $0x20] sm:$0xff]  }
   0x3   :  { %651 = vmatpush3.bf16.msra.mxu0 %v719_v0  ;;  %671 = vmatpush3.bf16.msra.mxu1 %v719_v0  ;;  %v27_v4 = vld [vmem:[%s1091_s3] sm:$0xff] }
   0x4   :  { %652 = vmatprep.subr.bf16.mxu0 %v720_v1  ;;  %672 = vmatprep.subr.bf16.mxu1 %v720_v1  ;;  %v28_v5 = vunpack.c.0.s8 %v27_v4  ;;  %v29_v6 = vunpack.c.1.s8 %v27_v4 }
   0x7   :  { %653 = vmatpush3.bf16.msra.mxu0 %v720_v1  ;;  %673 = vmatpush3.bf16.msra.mxu1 %v720_v1 }
   0x8   :  { %654 = vmatprep.subr.bf16.mxu0 %v721_v2  ;;  %674 = vmatprep.subr.bf16.mxu1 %v721_v2 }
   0x9   :  { %13 = vsyncpa [#allocation6], 0  ;;  %vm814_vm0 = vcmp.eq.s32.totalorder %v28_v5, 2  ;;  %vm818_vm1 = vcmp.eq.s32.totalorder %v29_v6, 2  ;;  %vm822_vm2 = vcmp.eq.s32.totalorder %v28_v5, 1  ;;  %vm826_vm3 = vcmp.eq.s32.totalorder %v29_v6, 1  ;;  %s426_s26 = scvt.s32.f32 %s1088_s0  ;;  %s428_s29 = scvt.s32.f32 %s1089_s1 }
   0xa   :  { %v1103_v10 = vmov 0  ;;  %v723_v11 = vld [vmem:[%s1092_s4 + $0x18] sm:$0xff]   ;;  %vm600_vm4 = vmpackc.low %vm818_vm1, %vm814_vm0  ;;  %v759_v12 = vmov 1.0|1.0   ;;  %v724_v13 = vld [vmem:[%s1092_s4 + $0x10] sm:$0xff]   ;;  %v30_v15 = vunpack.c.2.s8 %v27_v4  ;;  %v31_v16 = vunpack.c.3.s8 %v27_v4  ;;  %s761_s15 = smov 1  }
   0xb   :  { %655 = vmatpush3.bf16.msra.mxu0 %v721_v2  ;;  %675 = vmatpush3.bf16.msra.mxu1 %v721_v2  ;;  %v1104_v10 = vsel %vm826_vm3, 4294967295, %v1103_v10  ;;  %vm604_vm5 = vmpackc.low %vm826_vm3, %vm822_vm2  ;;  %v725_v14 = vld [vmem:[%s1092_s4 + $0x8] sm:$0xff]   ;;  %v726_v17 = vld [vmem:[%s1092_s4] sm:$0xff]   ;;  %v1111_v21 = vmov 0  ;;  %v760_v25 = vmov 0.0   ;;  %vm264_vm12 = vcmask 261120  }
   0xc   :  { %656 = vmatprep.subr.bf16.mxu0 %v722_v3  ;;  %676 = vmatprep.subr.bf16.mxu1 %v722_v3  ;;  %vm850_vm6 = vcmp.eq.s32.totalorder %v30_v15, 2  ;;  %vm854_vm7 = vcmp.eq.s32.totalorder %v31_v16, 2  ;;  %vm858_vm8 = vcmp.eq.s32.totalorder %v30_v15, 1  ;;  %vm862_vm9 = vcmp.eq.s32.totalorder %v31_v16, 1  ;;  %v727_v24 = vld [vmem:[%s1093_s5] sm:$0xff]   ;;  %v728_v56 = vld [vmem:[%s1093_s5 + $0x8] sm:$0xff]  }
   0xd   :  { %666 = vmatprep.mubr.msk.bf16.mxu0 %vm600_vm4, %v759_v12  ;;  %686 = vmatprep.mubr.msk.bf16.mxu1 %vm604_vm5, %v759_v12  ;;  %v1112_v21 = vsel %vm862_vm9, 4294967295, %v1111_v21  ;;  %vm602_vm10 = vmpackc.low %vm854_vm7, %vm850_vm6  ;;  %v586_v26 = vsel %vm850_vm6, 1.0, %v760_v25  ;;  %v587_v29 = vsel %vm854_vm7, 1.0, %v760_v25  ;;  %v590_v30 = vsel %vm858_vm8, 1.0, %v760_v25  ;;  %v23_v2 = vld [vmem:[%s1090_s2] sm:$0xff]  ;;  %v25_v5 = vld [vmem:[%s1090_s2 + $0x10] sm:$0xff] }
   0xe   :  { %vm606_vm11 = vmpackc.low %vm862_vm9, %vm858_vm8  ;;  %v584_v31 = vsel %vm814_vm0, 1.0, %v760_v25  ;;  %v591_v33 = vsel %vm862_vm9, 1.0, %v760_v25  ;;  %v585_v35 = vsel %vm818_vm1, 1.0, %v760_v25  ;;  %v589_v40 = vsel %vm826_vm3, 1.0, %v760_v25  ;;  %s575_s3 = sshll.u32 %s1094_s6, 4  ;;  %s576_s3 = int_to_ptr.vmem [resolvable:$true] %s575_s3 }
   0xf   :  { %657 = vmatpush3.bf16.msra.mxu0 %v722_v3  ;;  %677 = vmatpush3.bf16.msra.mxu1 %v722_v3  ;;  %v588_v46 = vsel %vm822_vm2, 1.0, %v760_v25  ;;  %v762_v49 = vmov 0   ;;  %v24_v3 = vld [vmem:[%s1090_s2 + $0x8] sm:$0xff]  ;;  %v451_v4 = vsub.f32 0.0, %v23_v2  ;;  %vm497_vm13 = vcmp.le.f32.partialorder %v25_v5, 0.0  ;;  %s745_s9 = scalar_lea.vmem %s576_s3, 16  ;;  %p750_p1 = scmp.lt.s32.totalorder %s576_s3, %s576_s3 }
  0x10   :  { %658 = vmatprep.subr.bf16.mxu0 %v723_v11  ;;  %678 = vmatprep.subr.bf16.mxu1 %v723_v11  ;;  %v452_v6 = vsub.f32 0.0, %v24_v3  ;;  %vm495_vm14 = vcmp.le.f32.partialorder %v23_v2, 0.0  ;;  %vm496_vm4 = vcmp.le.f32.partialorder %v24_v3, 0.0  ;;  %vm983_vm5 = vmxor %vm497_vm13, %vm850_vm6  ;;  %p746_p0 = scmp.ne.s32.totalorder %s576_s3, %s745_s9  ;;  %p751_p2 = scmp.lt.s32.totalorder %s745_s9, %s745_s9 }
  0x11   :  { %717 = vset.pattern.permute.xlu1 %v762_v49  ;;  %718 = vset.pattern.permute.xlu0 %v762_v49  ;;  %vm999_vm13 = vmxor %vm496_vm4, %vm818_vm1 }
  0x12   :  { %v953_v15 = vsel %vm818_vm1, %v452_v6, %v24_v3  ;;  %p752_p3 = por %p751_p2, %p750_p1 }
  0x13   :  { %659 = vmatpush3.bf16.msra.mxu0 %v723_v11  ;;  %679 = vmatpush3.bf16.msra.mxu1 %v723_v11  ;;  %v944_v11 = vld [vmem:[%s1090_s2 + $0x18] sm:$0xff] }
  0x14   :  { %660 = vmatprep.subr.bf16.mxu0 %v724_v13  ;;  %680 = vmatprep.subr.bf16.mxu1 %v724_v13  ;;  %vm498_vm9 = vcmp.le.f32.partialorder %v944_v11, 0.0  ;;  %p753_p4 = pnand %p752_p3, %p746_p0 }
  0x15   :  { %vm1020_vm4 = vmxor %vm498_vm9, %vm854_vm7 }
  0x17   :  { %661 = vmatpush3.bf16.msra.mxu0 %v724_v13  ;;  %681 = vmatpush3.bf16.msra.mxu1 %v724_v13  ;;  %v454_v13 = vsub.f32 0.0, %v944_v11 }
  0x18   :  { %662 = vmatprep.subr.bf16.mxu0 %v725_v14  ;;  %682 = vmatprep.subr.bf16.mxu1 %v725_v14 }
  0x1b   :  { %663 = vmatpush3.bf16.msra.mxu0 %v725_v14  ;;  %683 = vmatpush3.bf16.msra.mxu1 %v725_v14  ;;  %v949_v14 = vsel %vm814_vm0, %v451_v4, %v23_v2  ;;  %v460_v2 = vmax.f32 %v953_v15, 0.0 }
  0x1c   :  { %664 = vmatprep.subr.bf16.mxu0 %v726_v17  ;;  %684 = vmatprep.subr.bf16.mxu1 %v726_v17  ;;  %v459_v20 = vmax.f32 %v949_v14, 0.0 }
  0x1f   :  { %665 = vmatpush3.bf16.msra.mxu0 %v726_v17  ;;  %685 = vmatpush3.bf16.msra.mxu1 %v726_v17  ;;  %v463_v17 = vand.u32 2147483647, %v949_v14 }
  0x22   :  { %667 = vmatmul.mubr.msk.bf16.vlgmr.msra.gmra.mxu0 %vm602_vm10, %v759_v12  ;;  %687 = vmatmul.mubr.msk.bf16.vlgmr.msra.gmra.mxu1 %vm606_vm11, %v759_v12  ;;  %v453_v12 = vsub.f32 0.0, %v25_v5  ;;  %vm989_vm10 = vmxor %vm495_vm14, %vm814_vm0 }
  0x23   :  { %694 = vmatprep.mubr.msk.bf16.mxu0 %vm264_vm12, %v727_v24  ;;  %702 = vmatprep.mubr.msk.bf16.mxu1 %vm264_vm12, %v727_v24  ;;  %v963_v24 = vsel %vm854_vm7, %v454_v13, %v944_v11 }
  0x24   :  { %v957_v16 = vsel %vm850_vm6, %v453_v12, %v25_v5  ;;  %v462_v13 = vmax.f32 %v963_v24, 0.0 }
  0xe2   :  { %v874_v22 = vpop.f32.mrf.mxu0  ;;  %v876_v23 = vpop.f32.mrf.mxu1 }
  0xe3   :  { %v232_v36 = vadd.f32 %v874_v22, %v586_v26  ;;  %v242_v38 = vadd.f32 %v876_v23, %v590_v30  ;;  %v464_v26 = vand.u32 2147483647, %v953_v15  ;;  %v466_v30 = vand.u32 2147483647, %v963_v24 }
  0xe4   :  { %v884_v27 = vpop.f32.mrf.mxu0  ;;  %v886_v28 = vpop.f32.mrf.mxu1 }
  0xe5   :  { %v230_v42 = vadd.f32 %v584_v31, %v884_v27  ;;  %v240_v50 = vadd.f32 %v588_v46, %v886_v28  ;;  %v467_v31 = vsub.f32 0.0, %v463_v17 }
  0xe6   :  { %v899_v32 = vpop.f32.mrf.mxu0  ;;  %v904_v34 = vpop.f32.mrf.mxu1 }
  0xe7   :  { %v233_v37 = vadd.f32 %v899_v32, %v587_v29  ;;  %v243_v43 = vadd.f32 %v904_v34, %v591_v33  ;;  %v465_v29 = vand.u32 2147483647, %v957_v16  ;;  %v468_v33 = vsub.f32 0.0, %v464_v26 }
  0xe8   :  { %v912_v39 = vpop.f32.mrf.mxu0  ;;  %v917_v41 = vpop.f32.mrf.mxu1 }
  0xe9   :  { %v231_v44 = vadd.f32 %v585_v35, %v912_v39  ;;  %v235_v45 = vpack.c.bf16 %v233_v37, %v232_v36  ;;  %v241_v47 = vadd.f32 %v589_v40, %v917_v41  ;;  %v245_v51 = vpack.c.bf16 %v243_v43, %v242_v38 }
  0xea   :  { %v469_v35 = vsub.f32 0.0, %v465_v29  ;;  %v470_v36 = vsub.f32 0.0, %v466_v30  ;;  %v471_v37 = vmul.f32 1.442695, %v467_v31  ;;  %v473_v38 = vmul.f32 1.442695, %v468_v33 }
  0xeb   :  { %260 = vrot.lane.b32.xlu0 %v235_v45, %s761_s15  ;;  %v234_v48 = vpack.c.bf16 %v231_v44, %v230_v42  ;;  %v244_v52 = vpack.c.bf16 %v241_v47, %v240_v50 }
  0xec   :  { %v475_v40 = vmul.f32 1.442695, %v469_v35  ;;  %729 = vpow2.f32 %v471_v37  ;;  %v477_v42 = vmul.f32 1.442695, %v470_v36 }
  0xed   :  { %258 = vrot.lane.b32.xlu1 %v234_v48, %s761_s15  ;;  %731 = vpow2.f32 %v473_v38 }
  0xee   :  { %733 = vpow2.f32 %v475_v40 }
  0xef   :  { %324 = vrot.lane.b32.xlu0 %v245_v51, %s761_s15  ;;  %735 = vpow2.f32 %v477_v42 }
  0xf1   :  { %322 = vrot.lane.b32.xlu1 %v244_v52, %s761_s15  ;;  %v974_v52 = vstv %s426_s26 }
  0xf9   :  { %v730_v43 = vpop.eup %729 }
  0xfa   :  { %v732_v44 = vpop.eup %731  ;;  %v479_v46 = vadd.f32 1.0, %v730_v43 }
  0xfb   :  { %v734_v45 = vpop.eup %733  ;;  %v480_v48 = vadd.f32 1.0, %v732_v44 }
  0xfc   :  { %v736_v47 = vpop.eup %735  ;;  %v481_v49 = vadd.f32 1.0, %v734_v45  ;;  %737 = vlog2.f32 %v479_v46 }
  0xfd   :  { %v482_v50 = vadd.f32 1.0, %v736_v47  ;;  %739 = vlog2.f32 %v480_v48 }
  0xfe   :  { %741 = vlog2.f32 %v481_v49 }
  0xff   :  { %743 = vlog2.f32 %v482_v50 }
 0x15d   :  { %v261_v53 = vpop.permute.xlu0 %260 }
 0x15e   :  { %690 = vmatprep.subr.bf16.mxu0 %v261_v53 }
 0x15f   :  { %691 = vmatpush3.bf16.msra.mxu0 %v261_v53  ;;  %v259_v54 = vpop.permute.xlu1 %258 }
 0x160   :  { %692 = vmatprep.subr.bf16.mxu0 %v259_v54 }
 0x161   :  { %v325_v55 = vpop.permute.xlu0 %324 }
 0x162   :  { %698 = vmatprep.subr.bf16.mxu1 %v325_v55 }
 0x163   :  { %693 = vmatpush3.bf16.msra.mxu0 %v259_v54  ;;  %699 = vmatpush3.bf16.msra.mxu1 %v325_v55  ;;  %v323_v57 = vpop.permute.xlu1 %322  ;;  %v978_v54 = vstv %s428_s29 }
 0x164   :  { %700 = vmatprep.subr.bf16.mxu1 %v323_v57 }
 0x166   :  { %695 = vmatmul.mubr.msk.bf16.vlgmr.msra.gmra.mxu0 %vm264_vm12, %v728_v56 }
 0x167   :  { %701 = vmatpush3.bf16.msra.mxu1 %v323_v57 }
 0x16a   :  { %703 = vmatmul.mubr.msk.bf16.vlgmr.msra.gmra.mxu1 %vm264_vm12, %v728_v56 }
 0x226   :  { %v696_v58 = vpop.f32.mrf.mxu0 }
 0x227   :  { %389 = vperm.xlu1 %717, %v696_v58   ;;  %v738_v58 = vpop.eup %737 }
 0x228   :  { %v305_v59 = vpop.f32.mrf.mxu0  ;;  %v484_v3 = vmul.f32 0.6931472, %v738_v58 }
 0x22a   :  { %v704_v60 = vpop.f32.mrf.mxu1  ;;  %v697_v61 = vpop.f32.mrf.mxu0  ;;  %v491_v15 = vadd.f32 %v484_v3, %v459_v20 }
 0x22b   :  { %413 = vperm.xlu0 %718, %v704_v60   ;;  %v740_v60 = vpop.eup %739 }
 0x22c   :  { %v362_v62 = vpop.f32.mrf.mxu1  ;;  %v308_v0 = vpop.f32.mrf.mxu0  ;;  %v486_v4 = vmul.f32 0.6931472, %v740_v60 }
 0x22d   :  { %403 = vperm.xlu1 %717, %v362_v62  }
 0x22e   :  { %v705_v63 = vpop.f32.mrf.mxu1 }
 0x22f   :  { %379 = vperm.xlu0 %718, %v305_v59  }
 0x230   :  { %v365_v1 = vpop.f32.mrf.mxu1 }
 0x231   :  { %384 = vperm.xlu1 %717, %v308_v0  }
 0x233   :  { %408 = vperm.xlu0 %718, %v365_v1  }
 0x235   :  { %394 = vperm.xlu1 %717, %v697_v61  }
 0x237   :  { %418 = vperm.xlu0 %718, %v705_v63   ;;  %v742_v63 = vpop.eup %741 }
 0x238   :  { %v744_v0 = vpop.eup %743  ;;  %v488_v11 = vmul.f32 0.6931472, %v742_v63 }
 0x239   :  { %v490_v14 = vmul.f32 0.6931472, %v744_v0 }
 0x23b   :  { %v494_v29 = vadd.f32 %v490_v14, %v462_v13 }
 0x2a2   :  { %v390_v51 = vpop.permute.xlu1 %389 }
 0x2a3   :  { %v399_v53 = vadd.f32 %v874_v22, %v390_v51 }
 0x2a5   :  { %vm432_vm15 = vcmp.lt.f32.partialorder %v399_v53, %v974_v52 }
 0x2a6   :  { %v414_v55 = vpop.permute.xlu0 %413  ;;  %vm436_vm11 = vmand %vm850_vm6, %vm432_vm15 }
 0x2a7   :  { %v423_v56 = vadd.f32 %v876_v23, %v414_v55 }
 0x2a8   :  { %v404_v59 = vpop.permute.xlu1 %403 }
 0x2a9   :  { %vm441_vm12 = vcmp.lt.f32.partialorder %v423_v56, %v978_v54  ;;  %v421_v23 = vadd.f32 %v404_v59, %v886_v28 }
 0x2aa   :  { %vm445_vm14 = vmand %vm858_vm8, %vm441_vm12  ;;  %v380_v62 = vpop.permute.xlu0 %379 }
 0x2ab   :  { %vm1006_vm3 = vmor %vm436_vm11, %vm445_vm14  ;;  %vm439_vm6 = vcmp.lt.f32.partialorder %v421_v23, %v978_v54  ;;  %v397_v28 = vadd.f32 %v380_v62, %v884_v27  ;;  %v461_v27 = vmax.f32 %v957_v16, 0.0  ;;  %v492_v16 = vadd.f32 %v486_v4, %v460_v2 }
 0x2ac   :  { %vm443_vm15 = vmand %vm822_vm2, %vm439_vm6  ;;  %v385_v1 = vpop.permute.xlu1 %384  ;;  %v620_v44 = vsel %vm1006_vm3, 1.0, %v760_v25 }
 0x2ad   :  { %vm430_vm8 = vcmp.lt.f32.partialorder %v397_v28, %v974_v52  ;;  %v398_v5 = vadd.f32 %v385_v1, %v912_v39  ;;  %v493_v24 = vadd.f32 %v488_v11, %v461_v27 }
 0x2ae   :  { %vm434_vm11 = vmand %vm814_vm0, %vm430_vm8  ;;  %v409_v9 = vpop.permute.xlu0 %408 }
 0x2af   :  { %vm1031_vm12 = vmor %vm434_vm11, %vm443_vm15  ;;  %vm431_vm9 = vcmp.lt.f32.partialorder %v398_v5, %v974_v52  ;;  %v422_v12 = vadd.f32 %v409_v9, %v917_v41  ;;  %vm1125_vm15 = vnez %v1104_v10  ;;  %v505_v35 = vsel %vm1006_vm3, %v493_v24, 0.0 }
 0x2b0   :  { %v395_v7 = vpop.permute.xlu1 %394  ;;  %vm435_vm14 = vmand %vm818_vm1, %vm431_vm9  ;;  %v503_v8 = vsel %vm1031_vm12, %v491_v15, 0.0  ;;  %v618_v10 = vsel %vm1031_vm12, 1.0, %v760_v25 }
 0x2b1   :  { %vm440_vm6 = vcmp.lt.f32.partialorder %v422_v12, %v978_v54  ;;  %v400_v17 = vadd.f32 %v899_v32, %v395_v7 }
 0x2b2   :  { %vm444_vm8 = vmand %vm1125_vm15, %vm440_vm6  ;;  %v419_v41 = vpop.permute.xlu0 %418 }
 0x2b3   :  { %vm448_vm11 = vmor %vm435_vm14, %vm444_vm8  ;;  %vm433_vm2 = vcmp.lt.f32.partialorder %v400_v17, %v974_v52  ;;  %v424_v26 = vadd.f32 %v904_v34, %v419_v41  ;;  %vm1127_vm14 = vnez %v1112_v21 }
 0x2b4   :  { %vm522_vm0 = vmand %vm448_vm11, %vm999_vm13  ;;  %v504_v30 = vsel %vm448_vm11, %v492_v16, 0.0  ;;  %v619_v32 = vsel %vm448_vm11, 1.0, %v760_v25 }
 0x2b5   :  { %vm437_vm1 = vmand %vm854_vm7, %vm433_vm2  ;;  %vm442_vm9 = vcmp.lt.f32.partialorder %v424_v26, %v978_v54  ;;  %v507_v34 = vadd.f32 %v504_v30, %v503_v8  ;;  %v615_v33 = vsel %vm522_vm0, 1.0, %v760_v25  ;;  %v555_v36 = vadd.f32 %v619_v32, %v618_v10 }
 0x2b6   :  { %vm1126_vm13 = vmand %vm1031_vm12, %vm989_vm10 }
 0x2b7   :  { %v614_v31 = vsel %vm1126_vm13, 1.0, %v760_v25  ;;  %vm446_vm6 = vmand %vm1127_vm14, %vm442_vm9  ;;  %v508_v37 = vadd.f32 %v507_v34, %v505_v35  ;;  %v556_v46 = vadd.f32 %v620_v44, %v555_v36 }
 0x2b8   :  { %v533_v19 = vadd.f32 %v615_v33, %v614_v31  ;;  %vm450_vm7 = vmor %vm437_vm1, %vm446_vm6 }
 0x2b9   :  { %vm1128_vm2 = vmand %vm1006_vm3, %vm983_vm5  ;;  %v506_v40 = vsel %vm450_vm7, %v494_v29, 0.0  ;;  %v621_v47 = vsel %vm450_vm7, 1.0, %v760_v25 }
 0x2ba   :  { %v616_v38 = vsel %vm1128_vm2, 1.0, %v760_v25  ;;  %vm524_vm10 = vmand %vm450_vm7, %vm1020_vm4  ;;  %v509_v42 = vadd.f32 %v508_v37, %v506_v40  ;;  %v557_v48 = vadd.f32 %v621_v47, %v556_v46 }
 0x2bb   :  { %v534_v21 = vadd.f32 %v616_v38, %v533_v19  ;;  %v617_v43 = vsel %vm524_vm10, 1.0, %v760_v25 }
 0x2bc   :  { %510 = vadd.xlane.f32.xlu1 %v509_v42 }
 0x2bd   :  { %v535_v45 = vadd.f32 %v617_v43, %v534_v21 }
 0x2bf   :  { %536 = vadd.xlane.f32.xlu0 %v535_v45 }
 0x2c3   :  { %558 = vadd.xlane.f32.xlu0 %v557_v48 }
 0x345   :  { %v511_v49 = vpop.xlane.xlu1 %510 }
 0x346   :  { %v512_v50 = vrot.slane %v511_v49, 4 }
 0x348   :  { %v537_v51 = vpop.xlane.xlu0 %536  ;;  %v513_v53 = vadd.f32 %v512_v50, %v511_v49 }
 0x349   :  { %v538_v52 = vrot.slane %v537_v51, 4 }
 0x34a   :  { %v514_v55 = vrot.slane %v513_v53, 2 }
 0x34b   :  { %v539_v54 = vadd.f32 %v538_v52, %v537_v51 }
 0x34c   :  { %v559_v56 = vpop.xlane.xlu0 %558  ;;  %v515_v59 = vadd.f32 %v514_v55, %v513_v53 }
 0x34d   :  { %v540_v57 = vrot.slane %v539_v54, 2  ;;  %v560_v58 = vrot.slane %v559_v56, 4 }
 0x34e   :  { %v516_v23 = vrot.slane %v515_v59, 1 }
 0x34f   :  { %v561_v22 = vadd.f32 %v560_v58, %v559_v56  ;;  %v541_v60 = vadd.f32 %v540_v57, %v539_v54 }
 0x350   :  { %v517_v25 = vadd.f32 %v516_v23, %v515_v59 }
 0x351   :  { %v562_v61 = vrot.slane %v561_v22, 2  ;;  %v542_v62 = vrot.slane %v541_v60, 1 }
 0x352   :  { %706 = vpush %v517_v25 }
 0x353   :  { %v563_v63 = vadd.f32 %v562_v61, %v561_v22  ;;  %v543_v18 = vadd.f32 %v542_v62, %v541_v60 }
 0x355   :  { %708 = vpush %v543_v18  ;;  %v564_v28 = vrot.slane %v563_v63, 1 }
 0x357   :  { %v565_v0 = vadd.f32 %v564_v28, %v563_v63 }
 0x359   :  { %710 = vpush %v565_v0 }
 0x383   :  { %s707_s0 = spop %706 }
 0x384   :  { %520 = sst [smem:[#allocation5]] %s707_s0 }
 0x386   :  { %s709_s7 = spop %708 }
 0x387   :  { %546 = sst [smem:[#allocation5 + $0x1]] %s709_s7 }
 0x38a   :  { %s711_s8 = spop %710 }
 0x38b   :  { %568 = sst [smem:[#allocation5 + $0x2]] %s711_s8 }
 0x38c   :  { %756 = shalt.err (!%p753_p4)
}
 0x38d   :  { %s763_s10 = smov [#allocation5]  }
 0x38e   :  { %578 = dma.smem_to_vmem %s763_s10, 16, %s576_s3, [#allocation6]  }
 0x38f   :  { %757 = dma.done.wait [#allocation6], 16  }
 0x390   :  { %758 = vsyncadd [#allocation6], 4294967280 }
 0x391   :  { %582 = sfence }
 0x392   :  { %583 = vsyncpa [#allocation6], 1 }

</bundles_post_ra>
